<compile_context>
chip_gen: v7x
topology: tpu7x:2x2x1
jax: 0.10.0
libtpu: 0.0.40
codegen_flags: <defaults>
</compile_context>

<pallas_src>
import functools

import jax
import jax.numpy as jnp
from jax.experimental import pallas as pl
from jax.experimental.pallas import tpu as pltpu

C_IN = 512          # conv input channels (fixed by the module)
C_MID = 256         # conv output channels == embed_size (required by Reshape(-1, embed))
EMBED_SIZE = C_MID
ATT_PAD = 128       # pad each head's linear output to one full lane group


def _heads_kernel(x_ref, wc_ref, b1_ref, s2_ref, b2_ref, wl_ref, bl_ref, o_ref,
                  *, B, HW):
    """One attribute head per grid step (x stays VMEM-resident across heads).

    x_ref : (B*HW, C_IN)      bf16 channel-last activations (same block every step)
    wc_ref: (1, C_IN, C_MID)  bf16 conv weight, BN#1 scale pre-folded into columns
    b1_ref: (1, 1, C_MID)     f32 folded BatchNorm2d #1 bias
    s2_ref: (1, 1, C_MID)     f32 folded BatchNorm2d #2 scale (already / HW)
    b2_ref: (1, 1, C_MID)     f32 folded BatchNorm2d #2 bias
    wl_ref: (1, C_MID, ATT_PAD) bf16 linear weight (transposed, zero-padded)
    bl_ref: (1, 1, ATT_PAD)   f32 linear bias (zero-padded)
    o_ref : (1, B, ATT_PAD)   f32 lane-dense output slab
    """
    x = x_ref[...]                                                 # (B*HW, Cin) bf16
    # 1x1 conv (+ BN#1 scale, pre-folded) as one big MXU matmul, f32 accumulate.
    h = jnp.dot(x, wc_ref[0], preferred_element_type=jnp.float32)  # (B*HW, Cmid) f32
    # BN#1 bias + ReLU.
    h = jnp.maximum(h + b1_ref[0], 0.0)
    # AdaptiveAvgPool2d((1,1)): sum over HW; the 1/HW factor lives in s2.
    g = h.reshape(B, HW, C_MID).sum(axis=1)                        # (B, Cmid) f32
    # BN#2 (eval) + ReLU.
    g = jnp.maximum(g * s2_ref[0] + b2_ref[0], 0.0)
    # Dropout(0.5) is identity in eval mode; Reshape(-1, embed) is a no-op.
    # Linear(embed_size -> att_size), zero-padded to a lane-dense 128-wide store.
    o_ref[0] = (jnp.dot(g.astype(jnp.bfloat16), wl_ref[0],
                        preferred_element_type=jnp.float32) + bl_ref[0])


@functools.partial(jax.jit, static_argnames=("B", "HW"))
def _fused_heads(x, wc, b1, s2, b2, wl, bl, *, B, HW):
    N = wc.shape[0]
    # Fold 1/HW (runtime spatial size) into the BN#2 scale so the pool is a sum.
    s2 = s2 / jnp.float32(HW)

    flops = 2 * B * HW * C_IN * C_MID * N + 2 * B * C_MID * ATT_PAD * N
    bytes_accessed = (x.size * 2 + wc.size * 2 + wl.size * 2
                      + (b1.size + s2.size + b2.size + bl.size) * 4
                      + N * B * ATT_PAD * 4)

    kernel = functools.partial(_heads_kernel, B=B, HW=HW)
    return pl.pallas_call(
        kernel,
        out_shape=jax.ShapeDtypeStruct((N, B, ATT_PAD), jnp.float32),
        grid=(N,),
        in_specs=[
            # Activations: same block for every head -> DMA'd once, stays resident.
            pl.BlockSpec((B * HW, C_IN), lambda i: (0, 0)),
            # Per-head stacked weights: auto double-buffered across the head grid.
            pl.BlockSpec((1, C_IN, C_MID), lambda i: (i, 0, 0)),
            pl.BlockSpec((1, 1, C_MID), lambda i: (i, 0, 0)),
            pl.BlockSpec((1, 1, C_MID), lambda i: (i, 0, 0)),
            pl.BlockSpec((1, 1, C_MID), lambda i: (i, 0, 0)),
            pl.BlockSpec((1, C_MID, ATT_PAD), lambda i: (i, 0, 0)),
            pl.BlockSpec((1, 1, ATT_PAD), lambda i: (i, 0, 0)),
        ],
        out_specs=pl.BlockSpec((1, B, ATT_PAD), lambda i: (i, 0, 0)),
        compiler_params=pltpu.CompilerParams(
            dimension_semantics=("parallel",),           # heads shard across TCs (v7x)
            vmem_limit_bytes=32 * 1024 * 1024,
        ),
        cost_estimate=pl.CostEstimate(flops=flops, transcendentals=0,
                                      bytes_accessed=bytes_accessed),
    )(x, wc, b1, s2, b2, wl, bl)


def _fold_bn(gamma, beta, mean, var, eps):
    scale = gamma / jnp.sqrt(var + eps)
    bias = beta - mean * scale
    return scale.reshape(1, -1), bias.reshape(1, -1)


def init_params(key, attribute_dim):
    """Deterministic synthetic parameters matching the PyTorch module shapes,
    pre-folded and stacked along a leading head axis for the fused kernel."""
    assert max(attribute_dim) <= ATT_PAD
    wc_l, b1_l, s2_l, b2_l, wl_l, bl_l = [], [], [], [], [], []
    for att_size in attribute_dim:
        key, *ks = jax.random.split(key, 12)
        # Conv2d weight (Cmid, Cin, 1, 1) -> stored transposed as (Cin, Cmid).
        conv_w = 0.02 * jax.random.normal(ks[0], (C_MID, C_IN, 1, 1), jnp.float32)
        wc = conv_w.reshape(C_MID, C_IN).T
        # BatchNorm2d #1 (eval statistics), folded to scale/bias.
        g1 = 1.0 + 0.1 * jax.random.normal(ks[1], (C_MID,), jnp.float32)
        bt1 = 0.1 * jax.random.normal(ks[2], (C_MID,), jnp.float32)
        m1 = 0.1 * jax.random.normal(ks[3], (C_MID,), jnp.float32)
        v1 = 1.0 + 0.1 * jnp.abs(jax.random.normal(ks[4], (C_MID,), jnp.float32))
        s1, bb1 = _fold_bn(g1, bt1, m1, v1, 1e-3)
        # BatchNorm2d #2.
        g2 = 1.0 + 0.1 * jax.random.normal(ks[5], (C_MID,), jnp.float32)
        bt2 = 0.1 * jax.random.normal(ks[6], (C_MID,), jnp.float32)
        m2 = 0.1 * jax.random.normal(ks[7], (C_MID,), jnp.float32)
        v2 = 1.0 + 0.1 * jnp.abs(jax.random.normal(ks[8], (C_MID,), jnp.float32))
        s2, bb2 = _fold_bn(g2, bt2, m2, v2, 1e-3)
        # Linear(embed_size, att_size): weight (att_size, embed), bias (att_size,).
        lin_w = 0.05 * jax.random.normal(ks[9], (att_size, EMBED_SIZE), jnp.float32)
        lin_b = 0.05 * jax.random.normal(ks[10], (att_size,), jnp.float32)

        # Fold BN#1 scale into the conv weight columns; cast matmul weights to bf16.
        wc_l.append((wc * s1).astype(jnp.bfloat16))                       # (Cin, Cmid)
        b1_l.append(bb1)                                                  # (1, Cmid) f32
        s2_l.append(s2)                                                   # (1, Cmid) f32
        b2_l.append(bb2)
        wl = jnp.zeros((EMBED_SIZE, ATT_PAD), jnp.float32).at[:, :att_size].set(lin_w.T)
        wl_l.append(wl.astype(jnp.bfloat16))                              # (Cmid, 128)
        bl_l.append(jnp.zeros((1, ATT_PAD), jnp.float32).at[0, :att_size].set(lin_b))

    return dict(
        wc=jnp.stack(wc_l),            # (N, C_IN, C_MID)   bf16
        b1=jnp.stack(b1_l),            # (N, 1, C_MID)      f32
        s2=jnp.stack(s2_l),            # (N, 1, C_MID)      f32
        b2=jnp.stack(b2_l),            # (N, 1, C_MID)      f32
        wl=jnp.stack(wl_l),            # (N, C_MID, ATT_PAD) bf16
        bl=jnp.stack(bl_l),            # (N, 1, ATT_PAD)    f32
        att_sizes=tuple(attribute_dim),
    )


def encoder_clothing_forward(x_nchw, params):
    """Matches EncoderClothing.forward: dict {i: (B, att_size_i)}."""
    B, C, H, W = x_nchw.shape
    assert C == C_IN
    HW = H * W
    # NCHW -> (B*HW, C) channel-last bf16 for the kernel (layout + cast in XLA).
    x = jnp.transpose(x_nchw, (0, 2, 3, 1)).reshape(B * HW, C).astype(jnp.bfloat16)
    out = _fused_heads(x, params["wc"], params["b1"], params["s2"],
                       params["b2"], params["wl"], params["bl"], B=B, HW=HW)
    return {i: out[i, :, :a] for i, a in enumerate(params["att_sizes"])}


def encoder_clothing_reference(x_nchw, params):
    """Pure-JAX reference on the same folded bf16 parameters (no Pallas)."""
    B, C, H, W = x_nchw.shape
    HW = H * W
    x = jnp.transpose(x_nchw, (0, 2, 3, 1)).reshape(B * HW, C).astype(jnp.bfloat16)
    outputs = {}
    for i, a in enumerate(params["att_sizes"]):
        h = jnp.dot(x, params["wc"][i], preferred_element_type=jnp.float32)
        h = jnp.maximum(h + params["b1"][i], 0.0)
        g = h.reshape(B, HW, C_MID).sum(axis=1)
        g = jnp.maximum(g * (params["s2"][i] / HW) + params["b2"][i], 0.0)
        o = jnp.dot(g.astype(jnp.bfloat16), params["wl"][i],
                    preferred_element_type=jnp.float32) + params["bl"][i]
        outputs[i] = o[:, :a]
    return outputs


if __name__ == "__main__":
    key = jax.random.PRNGKey(0)
    k_x, k_p = jax.random.split(key)

    B, H, W = 2, 4, 4                 # small spatial; channels fixed by module (512)
    attribute_dim = [6, 9, 3]         # three attribute heads with different sizes
    # pool_size only affects self.linear, which the forward never uses.

    x = jax.random.normal(k_x, (B, C_IN, H, W), jnp.float32)   # NCHW like PyTorch
    params = init_params(k_p, attribute_dim)

    outs = encoder_clothing_forward(x, params)
    outs = {i: jax.block_until_ready(o) for i, o in outs.items()}

    refs = encoder_clothing_reference(x, params)
    for i in range(len(attribute_dim)):
        assert outs[i].shape == (B, attribute_dim[i]), outs[i].shape
        assert jnp.allclose(outs[i], refs[i], atol=2e-3, rtol=2e-3), f"mismatch head {i}"

    print("KERNEL_OK")
</pallas_src>

<mosaic_0001>
module attributes {stable_mosaic.version = 11 : i64} {
  func.func @_heads_kernel(%arg0: i32, %arg1: memref<32x512xbf16, #tpu.memory_space<vmem>>, %arg2: memref<1x512x256xbf16, #tpu.memory_space<vmem>>, %arg3: memref<1x1x256xf32, #tpu.memory_space<vmem>>, %arg4: memref<1x1x256xf32, #tpu.memory_space<vmem>>, %arg5: memref<1x1x256xf32, #tpu.memory_space<vmem>>, %arg6: memref<1x256x128xbf16, #tpu.memory_space<vmem>>, %arg7: memref<1x1x128xf32, #tpu.memory_space<vmem>>, %arg8: memref<1x2x128xf32, #tpu.memory_space<vmem>>) attributes {dimension_semantics = [#tpu.dimension_semantics<parallel>], iteration_bounds = array<i64: 3>, scalar_prefetch = 0 : i64, scratch_operands = 0 : i64, tpu.core_type = #tpu.core_type<tc>, window_params = [{pipeline_mode = #tpu.pipeline_mode<synchronous>, transform_indices = @transform_0, window_bounds = array<i64: 32, 512>}, {transform_indices = @transform_1, window_bounds = array<i64: 1, 512, 256>}, {transform_indices = @transform_2, window_bounds = array<i64: 1, 1, 256>}, {transform_indices = @transform_3, window_bounds = array<i64: 1, 1, 256>}, {transform_indices = @transform_4, window_bounds = array<i64: 1, 1, 256>}, {transform_indices = @transform_5, window_bounds = array<i64: 1, 256, 128>}, {transform_indices = @transform_6, window_bounds = array<i64: 1, 1, 128>}, {transform_indices = @transform_7, window_bounds = array<i64: 1, 2, 128>}]} {
    %c0 = arith.constant 0 : index
    %c0_0 = arith.constant 0 : index
    %0 = vector.load %arg1[%c0, %c0_0] : memref<32x512xbf16, #tpu.memory_space<vmem>>, vector<32x512xbf16>
    %c0_1 = arith.constant 0 : index
    %c0_2 = arith.constant 0 : index
    %c0_3 = arith.constant 0 : index
    %1 = vector.load %arg2[%c0_1, %c0_2, %c0_3] : memref<1x512x256xbf16, #tpu.memory_space<vmem>>, vector<1x512x256xbf16>
    %2 = vector.shape_cast %1 : vector<1x512x256xbf16> to vector<512x256xbf16>
    %cst = arith.constant dense<0.000000e+00> : vector<32x256xf32>
    %3 = tpu.matmul %0, %2, %cst {dimension_numbers = #tpu.dot_dimension_numbers<[1], [0], [0], [1], [0, 0, 1, 1], [], []>} : vector<32x512xbf16>, vector<512x256xbf16>, vector<32x256xf32> -> vector<32x256xf32>
    %c0_4 = arith.constant 0 : index
    %c0_5 = arith.constant 0 : index
    %c0_6 = arith.constant 0 : index
    %4 = vector.load %arg3[%c0_4, %c0_5, %c0_6] : memref<1x1x256xf32, #tpu.memory_space<vmem>>, vector<1x1x256xf32>
    %5 = vector.shape_cast %4 : vector<1x1x256xf32> to vector<1x256xf32>
    %6 = vector.broadcast %5 : vector<1x256xf32> to vector<32x256xf32>
    %7 = arith.addf %3, %6 : vector<32x256xf32>
    %cst_7 = arith.constant 0.000000e+00 : f32
    %8 = vector.broadcast %cst_7 : f32 to vector<32x256xf32>
    %9 = arith.maximumf %7, %8 : vector<32x256xf32>
    %10 = vector.shape_cast %9 : vector<32x256xf32> to vector<2x16x256xf32>
    %cst_8 = arith.constant dense<0.000000e+00> : vector<2x256xf32>
    %11 = vector.multi_reduction <add>, %10, %cst_8 [1] : vector<2x16x256xf32> to vector<2x256xf32>
    %c0_9 = arith.constant 0 : index
    %c0_10 = arith.constant 0 : index
    %c0_11 = arith.constant 0 : index
    %12 = vector.load %arg4[%c0_9, %c0_10, %c0_11] : memref<1x1x256xf32, #tpu.memory_space<vmem>>, vector<1x1x256xf32>
    %13 = vector.shape_cast %12 : vector<1x1x256xf32> to vector<1x256xf32>
    %14 = vector.broadcast %13 : vector<1x256xf32> to vector<2x256xf32>
    %15 = arith.mulf %11, %14 : vector<2x256xf32>
    %c0_12 = arith.constant 0 : index
    %c0_13 = arith.constant 0 : index
    %c0_14 = arith.constant 0 : index
    %16 = vector.load %arg5[%c0_12, %c0_13, %c0_14] : memref<1x1x256xf32, #tpu.memory_space<vmem>>, vector<1x1x256xf32>
    %17 = vector.shape_cast %16 : vector<1x1x256xf32> to vector<1x256xf32>
    %18 = vector.broadcast %17 : vector<1x256xf32> to vector<2x256xf32>
    %19 = arith.addf %15, %18 : vector<2x256xf32>
    %cst_15 = arith.constant 0.000000e+00 : f32
    %20 = vector.broadcast %cst_15 : f32 to vector<2x256xf32>
    %21 = arith.maximumf %19, %20 : vector<2x256xf32>
    %22 = arith.truncf %21 : vector<2x256xf32> to vector<2x256xbf16>
    %c0_16 = arith.constant 0 : index
    %c0_17 = arith.constant 0 : index
    %c0_18 = arith.constant 0 : index
    %23 = vector.load %arg6[%c0_16, %c0_17, %c0_18] : memref<1x256x128xbf16, #tpu.memory_space<vmem>>, vector<1x256x128xbf16>
    %24 = vector.shape_cast %23 : vector<1x256x128xbf16> to vector<256x128xbf16>
    %cst_19 = arith.constant dense<0.000000e+00> : vector<2x128xf32>
    %25 = tpu.matmul %22, %24, %cst_19 {dimension_numbers = #tpu.dot_dimension_numbers<[1], [0], [0], [1], [0, 0, 1, 1], [], []>} : vector<2x256xbf16>, vector<256x128xbf16>, vector<2x128xf32> -> vector<2x128xf32>
    %c0_20 = arith.constant 0 : index
    %c0_21 = arith.constant 0 : index
    %c0_22 = arith.constant 0 : index
    %26 = vector.load %arg7[%c0_20, %c0_21, %c0_22] : memref<1x1x128xf32, #tpu.memory_space<vmem>>, vector<1x1x128xf32>
    %27 = vector.shape_cast %26 : vector<1x1x128xf32> to vector<1x128xf32>
    %28 = vector.broadcast %27 : vector<1x128xf32> to vector<2x128xf32>
    %29 = arith.addf %25, %28 : vector<2x128xf32>
    %c0_23 = arith.constant 0 : index
    %c0_24 = arith.constant 0 : index
    %c0_25 = arith.constant 0 : index
    %30 = vector.load %arg8[%c0_23, %c0_24, %c0_25] : memref<1x2x128xf32, #tpu.memory_space<vmem>>, vector<1x2x128xf32>
    %31 = vector.shape_cast %30 : vector<1x2x128xf32> to vector<2x128xf32>
    %32 = vector.shape_cast %29 : vector<2x128xf32> to vector<1x2x128xf32>
    tpu.vector_store %arg8[%c0_23, %c0_24, %c0_25], %32 {strides = array<i32>} : memref<1x2x128xf32, #tpu.memory_space<vmem>>, vector<1x2x128xf32>,
    return
  }
  func.func @transform_0(%arg0: i32) -> (i32, i32) {
    %c0_i32 = arith.constant 0 : i32
    %c0_i32_0 = arith.constant 0 : i32
    %c0_i32_1 = arith.constant 0 : i32
    return %c0_i32, %c0_i32_0 : i32, i32
  }
  func.func @transform_1(%arg0: i32) -> (i32, i32, i32) {
    %c0_i32 = arith.constant 0 : i32
    %c0_i32_0 = arith.constant 0 : i32
    %c0_i32_1 = arith.constant 0 : i32
    return %arg0, %c0_i32, %c0_i32_0 : i32, i32, i32
  }
  func.func @transform_2(%arg0: i32) -> (i32, i32, i32) {
    %c0_i32 = arith.constant 0 : i32
    %c0_i32_0 = arith.constant 0 : i32
    %c0_i32_1 = arith.constant 0 : i32
    return %arg0, %c0_i32, %c0_i32_0 : i32, i32, i32
  }
  func.func @transform_3(%arg0: i32) -> (i32, i32, i32) {
    %c0_i32 = arith.constant 0 : i32
    %c0_i32_0 = arith.constant 0 : i32
    %c0_i32_1 = arith.constant 0 : i32
    return %arg0, %c0_i32, %c0_i32_0 : i32, i32, i32
  }
  func.func @transform_4(%arg0: i32) -> (i32, i32, i32) {
    %c0_i32 = arith.constant 0 : i32
    %c0_i32_0 = arith.constant 0 : i32
    %c0_i32_1 = arith.constant 0 : i32
    return %arg0, %c0_i32, %c0_i32_0 : i32, i32, i32
  }
  func.func @transform_5(%arg0: i32) -> (i32, i32, i32) {
    %c0_i32 = arith.constant 0 : i32
    %c0_i32_0 = arith.constant 0 : i32
    %c0_i32_1 = arith.constant 0 : i32
    return %arg0, %c0_i32, %c0_i32_0 : i32, i32, i32
  }
  func.func @transform_6(%arg0: i32) -> (i32, i32, i32) {
    %c0_i32 = arith.constant 0 : i32
    %c0_i32_0 = arith.constant 0 : i32
    %c0_i32_1 = arith.constant 0 : i32
    return %arg0, %c0_i32, %c0_i32_0 : i32, i32, i32
  }
  func.func @transform_7(%arg0: i32) -> (i32, i32, i32) {
    %c0_i32 = arith.constant 0 : i32
    %c0_i32_0 = arith.constant 0 : i32
    %c0_i32_1 = arith.constant 0 : i32
    return %arg0, %c0_i32, %c0_i32_0 : i32, i32, i32
  }
}

</mosaic_0001>

<bundles_post_ra>
// kernel: _fused_heads.1
= control target key start
LH: loop header
LB: loop body
LE: loop exit
PB: predicated region body
PF: predicated region fallthrough
CT: control target
= control target key end

     0   :  { %s2280_s0 = inlined_call_operand.hbm [shape: bf16[32,512], index: 0, kind: input, shape index: {}]   ;;  %s2281_s1 = inlined_call_operand.hbm [shape: bf16[3,512,256], index: 1, kind: input, shape index: {}]   ;;  %s2282_s2 = inlined_call_operand.vmem [shape: f32[3,1,256], index: 2, kind: input, shape index: {}]   ;;  %s2283_s3 = inlined_call_operand.vmem [shape: f32[3,1,256], index: 3, kind: input, shape index: {}]   ;;  %s2284_s4 = inlined_call_operand.vmem [shape: f32[3,1,256], index: 4, kind: input, shape index: {}]   ;;  %s2285_s5 = inlined_call_operand.hbm [shape: bf16[3,256,128], index: 5, kind: input, shape index: {}]   ;;  %s2286_s6 = inlined_call_operand.vmem [shape: f32[3,1,128], index: 6, kind: input, shape index: {}]   ;;  %s2287_s7 = inlined_call_operand.hbm [shape: f32[3,2,128], index: 7, kind: output, shape index: {}]  }
   0x1   :  { %2298 = sst [smem:[#allocation15_spill]] %s2281_s1 }
   0x2   :  { %12 = vsyncpa [#allocation3], 0 }
   0x3   :  { %13 = vsyncpa [#allocation6], 0 }
   0x4   :  { %15 = vsyncpa [#allocation6 + $0x1], 0 }
   0x5   :  { %16 = vsyncpa [#allocation4], 0 }
   0x6   :  { %18 = vsyncpa [#allocation4 + $0x1], 0  ;;  %s1948_s24 = smov 0   ;;  %s1950_s25 = smov 0  }
   0x7   :  { %s1952_s26 = smov 0   ;;  %s1954_s27 = smov 0  }
   0x8 LB: > { %2299 = sst [smem:[#allocation12_spill]] %s1892_s26  ;;  %s1969_s28 = sadd.s32 1, %s1896_s27   ;;  %s1896_s27 = sphi %s1954_s27, %s2318_s27   ;;  %s1892_s26 = sphi %s1952_s26, %s2320_s26   ;;  %s1888_s25 = sphi %s1950_s25, %s2322_s25   ;;  %s1884_s24 = sphi %s1948_s24, %s2321_s24  }
   0x9   : > { %2300 = sst [smem:[#allocation13_spill]] %s1969_s28  ;;  %s52_s29 = sadd.s32 1, %s1892_s26 }
   0xa   : > { %s49_s30 = ssub.s32 %s1896_s27, %s1969_s28  ;;  %p59_p0 = scmp.ne.s32.totalorder %s1892_s26, %s1888_s25 }
   0xb   : > { %p50_p1 = scmp.eq.s32.totalorder %s49_s30, 0  ;;  %p60_p2 = scmp.eq.s32.totalorder %s1896_s27, 0 }
   0xc   : > { %p1572_p3 = scmp.lt.s32.totalorder %s1896_s27, 3  ;;  %s258_s9 = sand.u32 1, %s1896_s27  }
   0xd   : > { %s1979_s8 = scalar_select %p50_p1, %s1892_s26, %s52_s29  }
   0xe   : > { %p61_p4 = por %p60_p2, %p59_p0  ;;  %s260_s10 = sand.u32 1, %s1892_s26  }
   0xf   : > { %2301 = sst [smem:[#allocation14_spill]] %s1979_s8  ;;  %s1399_s11 = sshll.u32 %s260_s10, 9 }
  0x10   : > { %s1506_s12 = sshll.u32 %s1896_s27, 13  ;;  %s2302_s1 = sld [smem:[#allocation15_spill]] }
  0x11   : > { %s262_s16 = scalar_lea.vmem [#allocation5], %s1399_s11  ;;  %p1994_p5 = pnand %p1572_p3, %p61_p4 }
  0x12   : > { %s269_s17 = sshll.u32 %s262_s16, 4  ;;  %s2000_s19 = scalar_lea.sflag [#allocation6], %s258_s9  ;;  %s1998_s17 = int_to_ptr.vmem [resolvable:$true] %s269_s17 }
  0x13   : > { %s2303_s18 = scalar_select %p1994_p5, 1, 0 }
  0x14   : > { %p2292_p7 = pneg %p1994_p5 }
  0x16   : > { %s1992_s15 = scalar_lea.hbm %s2302_s1, %s1506_s12  ;;  %s1743_s23 = scalar_lea.hbm %s2302_s1, 24576 }
  0x17   : > { %s1738_s20 = scalar_lea.hbm %s1992_s15, 8192  ;;  %p1744_p10 = scmp.lt.u32.totalorder %s1992_s15, %s2302_s1 }
  0x18   : > { %p1739_p6 = scmp.ne.s32.totalorder %s1992_s15, %s1738_s20  ;;  %p1745_p11 = scmp.lt.u32.totalorder %s1743_s23, %s1738_s20 }
  0x19   : > { %p1747_p13 = scmp.lt.u32.totalorder %s1738_s20, %s1992_s15 }
  0x1a   : > { %p1741_p8 = pnand %p2292_p7, %p1739_p6  ;;  %p1746_p12 = por %p1745_p11, %p1744_p10 }
  0x1c   : > { %p1742_p9 = pneg %p1741_p8  ;;  %p1748_p1 = por %p1747_p13, %p1746_p12 }
  0x1e   : > { %p1749_p2 = pnand %p1748_p1, %p1742_p9 }
  0x20   : > { %1752 = shalt.err (!%p1749_p2)
}
  0x21   : > { %s1753_s9 = scalar_lea.vmem %s1998_s17, 8192  ;;  %s1898_s11 = smov [#allocation5]  }
  0x22   : > { %p1754_p3 = scmp.ne.s32.totalorder %s1998_s17, %s1753_s9  ;;  %s1758_s12 = sshll.u32 %s1898_s11, 4  ;;  %s1759_s12 = int_to_ptr.vmem [resolvable:$false] %s1758_s12 }
  0x23   : > { %s1760_s13 = scalar_lea.vmem %s1759_s12, 16384  ;;  %p1761_p8 = scmp.lt.s32.totalorder %s1998_s17, %s1759_s12 }
  0x24   : > { %p1756_p4 = pnand %p1754_p3, %p2292_p7  ;;  %p1762_p10 = scmp.lt.s32.totalorder %s1760_s13, %s1753_s9 }
  0x26   : > { %p1757_p6 = pneg %p1756_p4  ;;  %p1763_p11 = por %p1762_p10, %p1761_p8 }
  0x28   : > { %p1764_p12 = pnand %p1763_p11, %p1757_p6 }
  0x2a   : > { %1767 = shalt.err (!%p1764_p12)
}
  0x2b   : > { %s1899_s14 = smov 128   ;;  %s1900_s16 = smov 8  }
  0x2c   : > { %1563 = dma.hbm_to_vmem [thread:$0]  (!%p1994_p5), %s1992_s15, 8192, %s1998_s17, %s2000_s19, %s1899_s14, %s1899_s14, %s1900_s16  }
  0x2d   : > { %s1402_s20 = sshll.u32 %s260_s10, 7  ;;  %s2031_s23 = sadd.s32 4294967295, %s1896_s27  }
  0x2e   : > { %s304_s21 = scalar_lea.vmem [#allocation7], %s1402_s20  ;;  %s1395_s29 = sadd.s32 4294967294, %s1896_s27  }
  0x2f   : > { %s311_s22 = sshll.u32 %s304_s21, 4  ;;  %p65_p9 = scmp.ne.s32.totalorder %s1888_s25, %s1884_s24  ;;  %s2064_s22 = int_to_ptr.vmem [resolvable:$true] %s311_s22 }
  0x30   : > { %p2291_p13 = scmp.eq.s32.totalorder %s2031_s23, 0  ;;  %p219_p1 = scmp.eq.s32.totalorder %s2031_s23, 2 }
  0x31   : > { %p225_p2 = scmp.eq.s32.totalorder %s1395_s29, 2  ;;  %p1396_p3 = scmp.ge.s32.totalorder %s1896_s27, 1 }
  0x32   : > { %p2041_p4 = por %p2291_p13, %p65_p9  ;;  %p2048_p6 = por %p219_p1, %p59_p0 }
  0x33   : > { %p2052_p8 = por %p225_p2, %p65_p9  ;;  %p232_p10 = scmp.lt.s32.totalorder %s1896_s27, 4 }
  0x34   : > { %s2304_s15 = scalar_select %p2041_p4, 1, 0 }
  0x35   : > { %s2305_s10 = scalar_select %p2048_p6, 1, 0 }
  0x36   : > { %s2306_s17 = scalar_select %p2052_p8, 1, 0 }
  0x37   : > { %p2057_p11 = pnand %p1396_p3, %p232_p10  ;;  %s1901_s9 = smov [#allocation2]  }
  0x38   : > { %s244_s11 = sshll.u32 %s1901_s9, 4  ;;  %s1507_s12 = sshll.u32 %s1896_s27, 11  ;;  %s245_s11 = int_to_ptr.vmem [resolvable:$true] %s244_s11 }
  0x39   : > { %s2307_s30 = scalar_select %p2057_p11, 1, 0 }
  0x3a   : > { %p1556_p12 = pneg %p2057_p11  ;;  %s2075_s20 = scalar_lea.hbm %s2285_s5, %s1507_s12 }
  0x3b   : > { %s1768_s9 = scalar_lea.hbm %s2280_s0, 1024 }
  0x3c   : > { %p2068_p0 = pnand %p1556_p12, %p2291_p13  ;;  %p1769_p9 = scmp.ne.s32.totalorder %s2280_s0, %s1768_s9 }
  0x3d   : > { %p1775_p10 = scmp.lt.u32.totalorder %s1768_s9, %s2280_s0 }
  0x3e   : > { %p1770_p1 = pneg %p2068_p0 }
  0x40   : > { %p1771_p2 = pnand %p1770_p1, %p1769_p9 }
  0x42   : > { %p1772_p3 = pneg %p1771_p2 }
  0x44   : > { %p1777_p12 = pnand %p1775_p10, %p1772_p3 }
  0x46   : > { %1780 = shalt.err (!%p1777_p12)
}
  0x47   : > { %s1781_s12 = scalar_lea.vmem %s245_s11, 1024  ;;  %p1789_p6 = scmp.lt.s32.totalorder %s245_s11, %s245_s11 }
  0x48   : > { %p1782_p13 = scmp.ne.s32.totalorder %s245_s11, %s1781_s12  ;;  %p1790_p4 = scmp.lt.s32.totalorder %s1781_s12, %s1781_s12 }
  0x4a   : > { %p1784_p7 = pnand %p1782_p13, %p1770_p1  ;;  %p1791_p11 = por %p1790_p4, %p1789_p6 }
  0x4c   : > { %p1785_p8 = pneg %p1784_p7 }
  0x4e   : > { %p1792_p5 = pnand %p1791_p11, %p1785_p8 }
  0x50   : > { %1795 = shalt.err (!%p1792_p5)
}
  0x51   : > { %s1902_s1 = smov 256   ;;  %s1903_s26 = smov 16  }
  0x52   : > { %1559 = dma.hbm_to_vmem [thread:$0]  (!%p2068_p0), %s2280_s0, 1024, %s245_s11, [#allocation3], %s1902_s1, %s1902_s1, %s1903_s26  }
  0x53   : > { %s1796_s14 = scalar_lea.hbm %s2075_s20, 2048  ;;  %p2309_p13 = scmp.ne.s32.totalorder %s2303_s18, 0 }
  0x54   : > { %p1797_p7 = scmp.ne.s32.totalorder %s2075_s20, %s1796_s14  ;;  %s1801_s29 = scalar_lea.hbm %s2285_s5, 6144 }
  0x55   : > { %p2310_p9 = pneg %p2309_p13  ;;  %p1802_p5 = scmp.lt.u32.totalorder %s2075_s20, %s2285_s5 }
  0x56   : > { %p1803_p8 = scmp.lt.u32.totalorder %s1801_s29, %s1796_s14  ;;  %p1805_p1 = scmp.lt.u32.totalorder %s1796_s14, %s2075_s20 }
  0x57   : > { %p1799_p4 = pnand %p1797_p7, %p2310_p9 }
  0x58   : > { %p1804_p11 = por %p1803_p8, %p1802_p5 }
  0x59   : > { %p1800_p6 = pneg %p1799_p4 }
  0x5a   : > { %p1806_p2 = por %p1805_p1, %p1804_p11 }
  0x5c   : > { %p1807_p3 = pnand %p1806_p2, %p1800_p6 }
  0x5e   : > { %1810 = shalt.err (!%p1807_p3)
}
  0x5f   : > { %s1811_s11 = scalar_lea.vmem %s2064_s22, 2048  ;;  %p2311_p10 = pmov %p2310_p9 }
  0x60   : > { %p1812_p0 = scmp.ne.s32.totalorder %s2064_s22, %s1811_s11  ;;  %s1904_s13 = smov [#allocation7]  }
  0x61   : > { %s1816_s1 = sshll.u32 %s1904_s13, 4  ;;  %s1817_s1 = int_to_ptr.vmem [resolvable:$false] %s1816_s1 }
  0x62   : > { %p1814_p12 = pnand %p1812_p0, %p2311_p10  ;;  %s1818_s26 = scalar_lea.vmem %s1817_s1, 4096 }
  0x63   : > { %p1819_p9 = scmp.lt.s32.totalorder %s2064_s22, %s1817_s1  ;;  %p1820_p4 = scmp.lt.s32.totalorder %s1818_s26, %s1811_s11 }
  0x64   : > { %p1815_p7 = pneg %p1814_p12 }
  0x65   : > { %p1821_p5 = por %p1820_p4, %p1819_p9 }
  0x67   : > { %p1822_p8 = pnand %p1821_p5, %p1815_p7 }
  0x69   : > { %1825 = shalt.err (!%p1822_p8)
}
  0x6a   : > { %s1905_s28 = smov 64   ;;  %s1906_s8 = smov 4  }
  0x6b   : > { %1566 = dma.hbm_to_vmem [thread:$0]  (!%p2309_p13), %s2075_s20, 2048, %s2064_s22, %s2000_s19, %s1905_s28, %s1905_s28, %s1906_s8  }
  0x6c   : > { %p2312_p6 = scmp.ne.s32.totalorder %s2307_s30, 0 }
  0x6d   : > { %p2313_p11 = scmp.eq.s32.totalorder (!%p2312_p6), %s2031_s23, 0 }
  0x6e   : > { %329 = sbr.rel (%p2312_p6) target bundleno = 678 (0x2a6), region = 48 }
  0x75   : > { %1871 = dma.done.wait (%p2313_p11), [#allocation3], 1024   ;;  %p2314_p1 = pmov %p2313_p11 }
  0x76   : > { %s335_s14 = sand.u32 1, %s2031_s23   ;;  %s2125_s16 = sand.u32 1, %s1888_s25  }
  0x77   : > { %1873 = vsyncadd (%p2314_p1), [#allocation3], 4294966272  ;;  %s1407_s21 = sshll.u32 %s2125_s16, 9  ;;  %s336_s29 = scalar_lea.sflag [#allocation6], %s335_s14 }
  0x78   : > { %s2128_s18 = scalar_lea.vmem [#allocation5], %s1407_s21  ;;  %p2315_p13 = scmp.ne.s32.totalorder %s2304_s15, 0 }
  0x7a   : > { %1875 = dma.done.wait (%p2315_p13), %s336_s29, 10240  }
  0x7b   : > { %1877 = vsyncadd (%p2315_p13), %s336_s29, 4294957056  ;;  %v1614_v0 = vld [vmem:[%s2128_s18 + $0x4] ss:$8 sps:$4 sm:$0xff]   ;;  %v1618_v2 = vld [vmem:[%s2128_s18] ss:$8 sps:$4 sm:$0xff]   ;;  %s1408_s19 = sshll.u32 %s2125_s16, 7 }
  0x7c   : > { %v1616_v1 = vld [vmem:[%s2128_s18 + $0x104] ss:$8 sps:$4 sm:$0xff]   ;;  %859 = vmatprep.subr.bf16.mxu1 %v1614_v0  ;;  %v1619_v3 = vld [vmem:[%s2128_s18 + $0x100] ss:$8 sps:$4 sm:$0xff]   ;;  %v1620_v4 = vld [vmem:[%s2128_s18 + $0x14] ss:$8 sps:$4 sm:$0xff]  }
  0x7d   : > { %912 = vmatprep.subr.bf16.mxu0 %v1616_v1  ;;  %860 = vmatpush1.bf16.msra.mxu1 %v1618_v2  ;;  %v1622_v5 = vld [vmem:[%s2128_s18 + $0x114] ss:$8 sps:$4 sm:$0xff]   ;;  %v1624_v6 = vld [vmem:[%s2128_s18 + $0x10] ss:$8 sps:$4 sm:$0xff]   ;;  %v1626_v8 = vld [vmem:[%s2128_s18 + $0x24] ss:$8 sps:$4 sm:$0xff]  }
  0x7e   : > { %913 = vmatpush1.bf16.msra.mxu0 %v1619_v3  ;;  %861 = vmatprep.subr.bf16.mxu1 %v1620_v4  ;;  %v1625_v7 = vld [vmem:[%s2128_s18 + $0x110] ss:$8 sps:$4 sm:$0xff]   ;;  %v1628_v9 = vld [vmem:[%s2128_s18 + $0x124] ss:$8 sps:$4 sm:$0xff]   ;;  %v1630_v10 = vld [vmem:[%s2128_s18 + $0x20] ss:$8 sps:$4 sm:$0xff]  }
  0x7f   : > { %914 = vmatprep.subr.bf16.mxu0 %v1622_v5  ;;  %v1631_v11 = vld [vmem:[%s2128_s18 + $0x120] ss:$8 sps:$4 sm:$0xff]   ;;  %v1632_v12 = vld [vmem:[%s2128_s18 + $0x34] ss:$8 sps:$4 sm:$0xff]   ;;  %v1636_v14 = vld [vmem:[%s2128_s18 + $0x30] ss:$8 sps:$4 sm:$0xff]  }
  0x80   : > { %v1634_v13 = vld [vmem:[%s2128_s18 + $0x134] ss:$8 sps:$4 sm:$0xff]   ;;  %v1637_v15 = vld [vmem:[%s2128_s18 + $0x130] ss:$8 sps:$4 sm:$0xff]   ;;  %v1638_v16 = vld [vmem:[%s2128_s18 + $0x44] ss:$8 sps:$4 sm:$0xff]  }
  0x81   : > { %862 = vmatpush1.bf16.msra.mxu1 %v1624_v6  ;;  %v1640_v17 = vld [vmem:[%s2128_s18 + $0x144] ss:$8 sps:$4 sm:$0xff]   ;;  %v1642_v18 = vld [vmem:[%s2128_s18 + $0x40] ss:$8 sps:$4 sm:$0xff]   ;;  %v1644_v20 = vld [vmem:[%s2128_s18 + $0x54] ss:$8 sps:$4 sm:$0xff]  }
  0x82   : > { %915 = vmatpush1.bf16.msra.mxu0 %v1625_v7  ;;  %863 = vmatprep.subr.bf16.mxu1 %v1626_v8  ;;  %v1643_v19 = vld [vmem:[%s2128_s18 + $0x140] ss:$8 sps:$4 sm:$0xff]   ;;  %v1646_v21 = vld [vmem:[%s2128_s18 + $0x154] ss:$8 sps:$4 sm:$0xff]   ;;  %v1648_v22 = vld [vmem:[%s2128_s18 + $0x50] ss:$8 sps:$4 sm:$0xff]  }
  0x83   : > { %916 = vmatprep.subr.bf16.mxu0 %v1628_v9  ;;  %v1649_v23 = vld [vmem:[%s2128_s18 + $0x150] ss:$8 sps:$4 sm:$0xff]   ;;  %v1650_v24 = vld [vmem:[%s2128_s18 + $0x64] ss:$8 sps:$4 sm:$0xff]   ;;  %v1654_v26 = vld [vmem:[%s2128_s18 + $0x60] ss:$8 sps:$4 sm:$0xff]  }
  0x84   : > { %v1652_v25 = vld [vmem:[%s2128_s18 + $0x164] ss:$8 sps:$4 sm:$0xff]   ;;  %v1655_v27 = vld [vmem:[%s2128_s18 + $0x160] ss:$8 sps:$4 sm:$0xff]   ;;  %v1656_v28 = vld [vmem:[%s2128_s18 + $0x74] ss:$8 sps:$4 sm:$0xff]  }
  0x85   : > { %864 = vmatpush1.bf16.msra.mxu1 %v1630_v10  ;;  %v1658_v29 = vld [vmem:[%s2128_s18 + $0x174] ss:$8 sps:$4 sm:$0xff]   ;;  %v1660_v30 = vld [vmem:[%s2128_s18 + $0x70] ss:$8 sps:$4 sm:$0xff]   ;;  %v1662_v32 = vld [vmem:[%s2128_s18 + $0x84] ss:$8 sps:$4 sm:$0xff]  }
  0x86   : > { %917 = vmatpush1.bf16.msra.mxu0 %v1631_v11  ;;  %865 = vmatprep.subr.bf16.mxu1 %v1632_v12  ;;  %v1661_v31 = vld [vmem:[%s2128_s18 + $0x170] ss:$8 sps:$4 sm:$0xff]   ;;  %v1664_v33 = vld [vmem:[%s2128_s18 + $0x184] ss:$8 sps:$4 sm:$0xff]   ;;  %v1666_v34 = vld [vmem:[%s2128_s18 + $0x80] ss:$8 sps:$4 sm:$0xff]  }
  0x87   : > { %918 = vmatprep.subr.bf16.mxu0 %v1634_v13  ;;  %v1667_v35 = vld [vmem:[%s2128_s18 + $0x180] ss:$8 sps:$4 sm:$0xff]   ;;  %v1668_v36 = vld [vmem:[%s2128_s18 + $0x94] ss:$8 sps:$4 sm:$0xff]   ;;  %v1672_v38 = vld [vmem:[%s2128_s18 + $0x90] ss:$8 sps:$4 sm:$0xff]  }
  0x88   : > { %v1670_v37 = vld [vmem:[%s2128_s18 + $0x194] ss:$8 sps:$4 sm:$0xff]   ;;  %v1673_v39 = vld [vmem:[%s2128_s18 + $0x190] ss:$8 sps:$4 sm:$0xff]   ;;  %v1674_v40 = vld [vmem:[%s2128_s18 + $0xa4] ss:$8 sps:$4 sm:$0xff]  }
  0x89   : > { %866 = vmatpush1.bf16.msra.mxu1 %v1636_v14  ;;  %v1676_v41 = vld [vmem:[%s2128_s18 + $0x1a4] ss:$8 sps:$4 sm:$0xff]   ;;  %v1678_v42 = vld [vmem:[%s2128_s18 + $0xa0] ss:$8 sps:$4 sm:$0xff]   ;;  %v1680_v44 = vld [vmem:[%s2128_s18 + $0xb4] ss:$8 sps:$4 sm:$0xff]  }
  0x8a   : > { %919 = vmatpush1.bf16.msra.mxu0 %v1637_v15  ;;  %867 = vmatprep.subr.bf16.mxu1 %v1638_v16  ;;  %v1679_v43 = vld [vmem:[%s2128_s18 + $0x1a0] ss:$8 sps:$4 sm:$0xff]   ;;  %v1682_v45 = vld [vmem:[%s2128_s18 + $0x1b4] ss:$8 sps:$4 sm:$0xff]   ;;  %v1684_v46 = vld [vmem:[%s2128_s18 + $0xb0] ss:$8 sps:$4 sm:$0xff]  }
  0x8b   : > { %920 = vmatprep.subr.bf16.mxu0 %v1640_v17  ;;  %v1685_v47 = vld [vmem:[%s2128_s18 + $0x1b0] ss:$8 sps:$4 sm:$0xff]   ;;  %v1686_v48 = vld [vmem:[%s2128_s18 + $0xc4] ss:$8 sps:$4 sm:$0xff]   ;;  %v1690_v52 = vld [vmem:[%s2128_s18 + $0xc0] ss:$8 sps:$4 sm:$0xff]  }
  0x8c   : > { %v1712_v49 = vld [vmem:[#allocation2 + $0x4] ss:$16 sps:$4 sm:$0xff]   ;;  %v1715_v51 = vld [vmem:[#allocation2 + $0xc] ss:$16 sps:$4 sm:$0xff]   ;;  %v1691_v53 = vld [vmem:[%s2128_s18 + $0x1c0] ss:$8 sps:$4 sm:$0xff]  }
  0x8d   : > { %868 = vmatpush1.bf16.msra.mxu1 %v1642_v18  ;;  %v1688_v50 = vld [vmem:[%s2128_s18 + $0x1c4] ss:$8 sps:$4 sm:$0xff]   ;;  %891 = vmatprep.mubr.bf16.mxu1 %v1712_v49  ;;  %v1692_v54 = vld [vmem:[%s2128_s18 + $0xd4] ss:$8 sps:$4 sm:$0xff]   ;;  %v1696_v56 = vld [vmem:[%s2128_s18 + $0xd0] ss:$8 sps:$4 sm:$0xff]  }
  0x8e   : > { %921 = vmatpush1.bf16.msra.mxu0 %v1643_v19  ;;  %869 = vmatprep.subr.bf16.mxu1 %v1644_v20  ;;  %v1694_v55 = vld [vmem:[%s2128_s18 + $0x1d4] ss:$8 sps:$4 sm:$0xff]   ;;  %v1697_v57 = vld [vmem:[%s2128_s18 + $0x1d0] ss:$8 sps:$4 sm:$0xff]   ;;  %v1698_v58 = vld [vmem:[%s2128_s18 + $0xe4] ss:$8 sps:$4 sm:$0xff]  }
  0x8f   : > { %922 = vmatprep.subr.bf16.mxu0 %v1646_v21  ;;  %944 = vmatprep.mubr.bf16.mxu0 %v1715_v51  ;;  %v1700_v59 = vld [vmem:[%s2128_s18 + $0x1e4] ss:$8 sps:$4 sm:$0xff]   ;;  %v1702_v60 = vld [vmem:[%s2128_s18 + $0xe0] ss:$8 sps:$4 sm:$0xff]   ;;  %v1704_v62 = vld [vmem:[%s2128_s18 + $0xf4] ss:$8 sps:$4 sm:$0xff]  }
  0x90   : > { %v1703_v61 = vld [vmem:[%s2128_s18 + $0x1e0] ss:$8 sps:$4 sm:$0xff]   ;;  %v1706_v63 = vld [vmem:[%s2128_s18 + $0x1f4] ss:$8 sps:$4 sm:$0xff]   ;;  %v1708_v0 = vld [vmem:[%s2128_s18 + $0xf0] ss:$8 sps:$4 sm:$0xff]  }
  0x91   : > { %870 = vmatpush1.bf16.msra.mxu1 %v1648_v22  ;;  %v1709_v1 = vld [vmem:[%s2128_s18 + $0x1f0] ss:$8 sps:$4 sm:$0xff]   ;;  %v1716_v4 = vld [vmem:[#allocation2 + $0x24] ss:$16 sps:$4 sm:$0xff]   ;;  %v1718_v5 = vld [vmem:[#allocation2 + $0x2c] ss:$16 sps:$4 sm:$0xff]  }
  0x92   : > { %923 = vmatpush1.bf16.msra.mxu0 %v1649_v23  ;;  %871 = vmatprep.subr.bf16.mxu1 %v1650_v24  ;;  %v1710_v2 = vld [vmem:[#allocation2] ss:$16 sps:$4 sm:$0xff]   ;;  %v1713_v3 = vld [vmem:[#allocation2 + $0x8] ss:$16 sps:$4 sm:$0xff]   ;;  %s348_s22 = scalar_lea.vmem [#allocation7], %s1408_s19  ;;  %p399_p2 = scmp.lt.s32.totalorder %s2031_s23, 2  ;;  %v489_v24 = vlaneseq }
  0x93   : > { %924 = vmatprep.subr.bf16.mxu0 %v1652_v25  ;;  %v1720_v6 = vld [vmem:[#allocation2 + $0x20] ss:$16 sps:$4 sm:$0xff]   ;;  %v1721_v7 = vld [vmem:[#allocation2 + $0x28] ss:$16 sps:$4 sm:$0xff]   ;;  %vm1089_vm0 = vcmask 1041409   ;;  %s1409_s14 = sshll.u32 %s2125_s16, 1 }
  0x94   : > { %v1722_v8 = vld [vmem:[%s348_s22 + $0x40] sm:$0xff]   ;;  %v1724_v10 = vld [vmem:[%s348_s22 + $0x48] sm:$0xff]   ;;  %v1726_v12 = vld [vmem:[%s348_s22 + $0x50] sm:$0xff]   ;;  %s2201_s15 = scalar_select %p399_p2, %s2031_s23, 2  ;;  %v490_v25 = vshrl.u32 %v489_v24, 7 }
  0x95   : > { %872 = vmatpush1.bf16.msra.mxu1 %v1654_v26  ;;  %v1723_v9 = vld [vmem:[%s348_s22] sm:$0xff]   ;;  %v1725_v11 = vld [vmem:[%s348_s22 + $0x8] sm:$0xff]   ;;  %v1727_v13 = vld [vmem:[%s348_s22 + $0x10] sm:$0xff]   ;;  %s1503_s19 = sshll.u32 %s2031_s23, 5  ;;  %p2316_p0 = scmp.ne.s32.totalorder %s2305_s10, 0 }
  0x96   : > { %925 = vmatpush1.bf16.msra.mxu0 %v1655_v27  ;;  %873 = vmatprep.subr.bf16.mxu1 %v1656_v28  ;;  %v1728_v14 = vld [vmem:[%s348_s22 + $0x58] sm:$0xff]   ;;  %v1730_v16 = vld [vmem:[%s348_s22 + $0x60] sm:$0xff]   ;;  %v1732_v18 = vld [vmem:[%s348_s22 + $0x68] sm:$0xff]   ;;  %s2204_s30 = sshll.u32 %s2201_s15, 1  ;;  %v2210_v26 = vsub.s32 0, %v490_v25  ;;  %v2212_v28 = vsub.s32 1, %v490_v25  ;;  %s413_s18 = scalar_lea.vmem %s2286_s6, %s2201_s15 }
  0x97   : > { %926 = vmatprep.subr.bf16.mxu0 %v1658_v29  ;;  %v1729_v15 = vld [vmem:[%s348_s22 + $0x18] sm:$0xff]   ;;  %v1731_v17 = vld [vmem:[%s348_s22 + $0x20] sm:$0xff]   ;;  %v1733_v19 = vld [vmem:[%s348_s22 + $0x28] sm:$0xff]   ;;  %s402_s12 = scalar_lea.vmem %s2282_s2, %s2204_s30  ;;  %s406_s1 = scalar_lea.vmem %s2283_s3, %s2204_s30 }
  0x98   : > { %v1734_v20 = vld [vmem:[%s348_s22 + $0x70] sm:$0xff]   ;;  %v1736_v22 = vld [vmem:[%s348_s22 + $0x78] sm:$0xff]   ;;  %v487_v27 = vld [vmem:[%s402_s12] sm:$0x3]  ;;  %s410_s8 = scalar_lea.vmem %s2284_s4, %s2204_s30  ;;  %s2237_s12 = scalar_lea.hbm %s2287_s7, %s1503_s19 }
  0x99   : > { %874 = vmatpush1.bf16.msra.mxu1 %v1660_v30  ;;  %v1735_v21 = vld [vmem:[%s348_s22 + $0x30] sm:$0xff]   ;;  %v1737_v23 = vld [vmem:[%s348_s22 + $0x38] sm:$0xff]   ;;  %v492_v29 = vrot.slane %v487_v27, %v2210_v26  ;;  %v496_v30 = vrot.slane %v487_v27, %v2212_v28  ;;  %s398_s22 = scalar_lea.vmem [#allocation8], %s1409_s14  ;;  %s1235_s15 = scalar_lea.sflag [#allocation4], %s2125_s16 }
  0x9a   : > { %927 = vmatpush1.bf16.msra.mxu0 %v1661_v31  ;;  %875 = vmatprep.subr.bf16.mxu1 %v1662_v32  ;;  %s1248_s30 = sshll.u32 %s398_s22, 4  ;;  %s1907_s23 = smov [#allocation8]   ;;  %s2239_s30 = int_to_ptr.vmem [resolvable:$true] %s1248_s30 }
  0x9b   : > { %928 = vmatprep.subr.bf16.mxu0 %v1664_v33  ;;  %s1826_s11 = scalar_lea.vmem %s2239_s30, 32  ;;  %s1830_s13 = sshll.u32 %s1907_s23, 4  ;;  %s1831_s13 = int_to_ptr.vmem [resolvable:$false] %s1830_s13 }
  0x9c   : > { %p1827_p3 = scmp.ne.s32.totalorder %s2239_s30, %s1826_s11  ;;  %p1833_p7 = scmp.lt.s32.totalorder %s2239_s30, %s1831_s13 }
  0x9d   : > { %876 = vmatpush1.bf16.msra.mxu1 %v1666_v34 }
  0x9e   : > { %929 = vmatpush1.bf16.msra.mxu0 %v1667_v35  ;;  %877 = vmatprep.subr.bf16.mxu1 %v1668_v36  ;;  %p1828_p10 = pnand %p1827_p3, %p2316_p0 }
  0x9f   : > { %930 = vmatprep.subr.bf16.mxu0 %v1670_v37 }
  0xa0   : > { %p1829_p12 = pneg %p1828_p10 }
  0xa1   : > { %878 = vmatpush1.bf16.msra.mxu1 %v1672_v38 }
  0xa2   : > { %931 = vmatpush1.bf16.msra.mxu0 %v1673_v39  ;;  %879 = vmatprep.subr.bf16.mxu1 %v1674_v40 }
  0xa3   : > { %932 = vmatprep.subr.bf16.mxu0 %v1676_v41 }
  0xa5   : > { %880 = vmatpush1.bf16.msra.mxu1 %v1678_v42 }
  0xa6   : > { %933 = vmatpush1.bf16.msra.mxu0 %v1679_v43  ;;  %881 = vmatprep.subr.bf16.mxu1 %v1680_v44 }
  0xa7   : > { %934 = vmatprep.subr.bf16.mxu0 %v1682_v45 }
  0xa9   : > { %882 = vmatpush1.bf16.msra.mxu1 %v1684_v46 }
  0xaa   : > { %935 = vmatpush1.bf16.msra.mxu0 %v1685_v47  ;;  %883 = vmatprep.subr.bf16.mxu1 %v1686_v48 }
  0xab   : > { %936 = vmatprep.subr.bf16.mxu0 %v1688_v50 }
  0xad   : > { %884 = vmatpush1.bf16.msra.mxu1 %v1690_v52 }
  0xae   : > { %937 = vmatpush1.bf16.msra.mxu0 %v1691_v53  ;;  %885 = vmatprep.subr.bf16.mxu1 %v1692_v54 }
  0xaf   : > { %938 = vmatprep.subr.bf16.mxu0 %v1694_v55 }
  0xb1   : > { %886 = vmatpush1.bf16.msra.mxu1 %v1696_v56 }
  0xb2   : > { %939 = vmatpush1.bf16.msra.mxu0 %v1697_v57  ;;  %887 = vmatprep.subr.bf16.mxu1 %v1698_v58 }
  0xb3   : > { %940 = vmatprep.subr.bf16.mxu0 %v1700_v59 }
  0xb5   : > { %888 = vmatpush1.bf16.msra.mxu1 %v1702_v60 }
  0xb6   : > { %941 = vmatpush1.bf16.msra.mxu0 %v1703_v61  ;;  %889 = vmatprep.subr.bf16.mxu1 %v1704_v62 }
  0xb7   : > { %942 = vmatprep.subr.bf16.mxu0 %v1706_v63 }
  0xb9   : > { %890 = vmatpush1.bf16.msra.mxu1 %v1708_v0 }
  0xba   : > { %943 = vmatpush1.bf16.msra.mxu0 %v1709_v1  ;;  %1508 = vmatprep.subr.bf16.mxu1 %v1722_v8 }
  0xbc   : > { %892 = vmatmul.mubr.bf16.vlgmr.msra.gmra.mrb[0].mxu1 %v1710_v2 }
  0xbd   : > { %945 = vmatmul.mubr.bf16.vlgmr.msra.gmra.mrb[0].mxu0 %v1713_v3  ;;  %901 = vmatprep.mubr.bf16.mxu1 %v1716_v4 }
  0xbe   : > { %954 = vmatprep.mubr.bf16.mxu0 %v1718_v5  ;;  %1509 = vmatpush3.bf16.msra.mxu1 %v1723_v9 }
  0xbf   : > { %1510 = vmatprep.subr.bf16.mxu1 %v1724_v10 }
  0xc2   : > { %1511 = vmatpush3.bf16.msra.mxu1 %v1725_v11 }
  0xc3   : > { %1512 = vmatprep.subr.bf16.mxu1 %v1726_v12 }
  0xc4   : > { %902 = vmatmul.mubr.bf16.gmra.mrb[4].mxu1 %v1720_v6 }
  0xc5   : > { %955 = vmatmul.mubr.bf16.gmra.mrb[4].mxu0 %v1721_v7 }
  0xc6   : > { %1513 = vmatpush3.bf16.msra.mxu1 %v1727_v13 }
  0xc7   : > { %1514 = vmatprep.subr.bf16.mxu1 %v1728_v14 }
  0xca   : > { %1515 = vmatpush3.bf16.msra.mxu1 %v1729_v15 }
  0xcb   : > { %1516 = vmatprep.subr.bf16.mxu1 %v1730_v16 }
  0xce   : > { %1517 = vmatpush3.bf16.msra.mxu1 %v1731_v17  ;;  %v1001_v17 = vld [vmem:[%s406_s1] sm:$0x3]  ;;  %s1832_s1 = scalar_lea.vmem %s1831_s13, 64 }
  0xcf   : > { %1518 = vmatprep.subr.bf16.mxu1 %v1732_v18  ;;  %v1006_v25 = vrot.slane %v1001_v17, %v2210_v26  ;;  %p1834_p9 = scmp.lt.s32.totalorder %s1832_s1, %s1826_s11 }
  0xd1   : > { %p1835_p4 = por %p1834_p9, %p1833_p7 }
  0xd2   : > { %1519 = vmatpush3.bf16.msra.mxu1 %v1733_v19 }
  0xd3   : > { %1520 = vmatprep.subr.bf16.mxu1 %v1734_v20  ;;  %p1836_p5 = pnand %p1835_p4, %p1829_p12 }
  0xd6   : > { %1521 = vmatpush3.bf16.msra.mxu1 %v1735_v21 }
  0xd7   : > { %1522 = vmatprep.subr.bf16.mxu1 %v1736_v22 }
  0xda   : > { %1523 = vmatpush3.bf16.msra.mxu1 %v1737_v23 }
 0x18f   : > { %v893_v31 = vpop.f32.mrb[0].mxu1 }
 0x190   : > { %v946_v32 = vpop.f32.mrb[0].mxu0  ;;  %v894_v33 = vadd.f32 %v893_v31, %v492_v29  ;;  %v895_v34 = vpop.f32.mrb[1].mxu1  ;;  %v1010_v31 = vrot.slane %v1001_v17, %v2212_v28 }
 0x191   : > { %v948_v35 = vpop.f32.mrb[1].mxu0  ;;  %v896_v36 = vadd.f32 %v895_v34, %v496_v30  ;;  %v897_v37 = vpop.f32.mrb[2].mxu1 }
 0x192   : > { %v950_v38 = vpop.f32.mrb[2].mxu0  ;;  %v947_v39 = vadd.f32 %v946_v32, %v894_v33  ;;  %v898_v40 = vadd.f32 %v897_v37, %v492_v29  ;;  %v899_v41 = vpop.f32.mrb[3].mxu1 }
 0x193   : > { %v952_v42 = vpop.f32.mrb[3].mxu0  ;;  %v949_v43 = vadd.f32 %v948_v35, %v896_v36  ;;  %v900_v44 = vadd.f32 %v899_v41, %v496_v30 }
 0x194   : > { %v951_v45 = vadd.f32 %v950_v38, %v898_v40  ;;  %v965_v47 = vmax.f32 %v947_v39, 0.0 }
 0x195   : > { %v953_v46 = vadd.f32 %v952_v42, %v900_v44  ;;  %v966_v49 = vmax.f32 %v949_v43, 0.0 }
 0x196   : > { %v967_v48 = vmax.f32 %v951_v45, 0.0 }
 0x197   : > { %v968_v50 = vmax.f32 %v953_v46, 0.0  ;;  %v903_v51 = vpop.f32.mrb[4].mxu1 }
 0x198   : > { %v956_v52 = vpop.f32.mrb[4].mxu0  ;;  %v973_v53 = vadd.f32 %v967_v48, %v965_v47  ;;  %v904_v54 = vadd.f32 %v903_v51, %v492_v29  ;;  %v905_v55 = vpop.f32.mrb[5].mxu1 }
 0x199   : > { %v958_v56 = vpop.f32.mrb[5].mxu0  ;;  %v980_v57 = vadd.f32 %v968_v50, %v966_v49  ;;  %v906_v58 = vadd.f32 %v905_v55, %v496_v30  ;;  %v907_v59 = vpop.f32.mrb[6].mxu1 }
 0x19a   : > { %v960_v60 = vpop.f32.mrb[6].mxu0  ;;  %v974_v61 = vrot.slane %v973_v53, 4  ;;  %v957_v62 = vadd.f32 %v956_v52, %v904_v54  ;;  %v908_v63 = vadd.f32 %v907_v59, %v492_v29  ;;  %v909_v0 = vpop.f32.mrb[7].mxu1  ;;  %v1017_v29 = vld [vmem:[%s410_s8] sm:$0x3] }
 0x19b   : > { %v962_v1 = vpop.f32.mrb[7].mxu0  ;;  %v981_v2 = vrot.slane %v980_v57, 4  ;;  %v959_v3 = vadd.f32 %v958_v56, %v906_v58  ;;  %v910_v4 = vadd.f32 %v909_v0, %v496_v30  ;;  %v1022_v36 = vrot.slane %v1017_v29, %v2210_v26 }
 0x19c   : > { %v975_v5 = vadd.f32 %v974_v61, %v973_v53  ;;  %v961_v6 = vadd.f32 %v960_v60, %v908_v63  ;;  %v969_v10 = vmax.f32 %v957_v62, 0.0  ;;  %v1026_v40 = vrot.slane %v1017_v29, %v2212_v28 }
 0x19d   : > { %v982_v7 = vadd.f32 %v981_v2, %v980_v57  ;;  %v963_v8 = vadd.f32 %v962_v1, %v910_v4  ;;  %v970_v13 = vmax.f32 %v959_v3, 0.0  ;;  %v1485_v4 = vld [vmem:[%s413_s18] ss:$0 sm:$0xff] }
 0x19e   : > { %v976_v9 = vrot.slane %v975_v5, 2  ;;  %v971_v11 = vmax.f32 %v961_v6, 0.0 }
 0x19f   : > { %v983_v12 = vrot.slane %v982_v7, 2  ;;  %v972_v14 = vmax.f32 %v963_v8, 0.0 }
 0x1a0   : > { %v977_v15 = vadd.f32 %v976_v9, %v975_v5  ;;  %v987_v16 = vadd.f32 %v971_v11, %v969_v10 }
 0x1a1   : > { %v984_v18 = vadd.f32 %v983_v12, %v982_v7  ;;  %v994_v19 = vadd.f32 %v972_v14, %v970_v13 }
 0x1a2   : > { %v978_v20 = vrot.slane %v977_v15, 1  ;;  %v988_v21 = vrot.slane %v987_v16, 4 }
 0x1a3   : > { %v985_v22 = vrot.slane %v984_v18, 1  ;;  %v995_v23 = vrot.slane %v994_v19, 4 }
 0x1a4   : > { %v979_v24 = vadd.f32 %v978_v20, %v977_v15  ;;  %v989_v27 = vadd.f32 %v988_v21, %v987_v16 }
 0x1a5   : > { %v986_v30 = vadd.f32 %v985_v22, %v984_v18  ;;  %v996_v32 = vadd.f32 %v995_v23, %v994_v19 }
 0x1a6   : > { %v990_v33 = vrot.slane %v989_v27, 2  ;;  %v1013_v35 = vmul.f32 %v1006_v25, %v979_v24 }
 0x1a7   : > { %v997_v34 = vrot.slane %v996_v32, 2  ;;  %v1014_v38 = vmul.f32 %v1010_v31, %v986_v30 }
 0x1a8   : > { %v991_v37 = vadd.f32 %v990_v33, %v989_v27  ;;  %v1029_v43 = vadd.f32 %v1022_v36, %v1013_v35 }
 0x1a9   : > { %v998_v39 = vadd.f32 %v997_v34, %v996_v32  ;;  %v1030_v46 = vadd.f32 %v1026_v40, %v1014_v38 }
 0x1aa   : > { %v992_v41 = vrot.slane %v991_v37, 1  ;;  %v1033_v49 = vmax.f32 %v1029_v43, 0.0 }
 0x1ab   : > { %v999_v42 = vrot.slane %v998_v39, 1  ;;  %v1034_v52 = vmax.f32 %v1030_v46, 0.0 }
 0x1ac   : > { %v993_v44 = vadd.f32 %v992_v41, %v991_v37  ;;  %v1037_v55 = vpack.c.bf16 %v1033_v49, %v1033_v49 }
 0x1ad   : > { %v1000_v45 = vadd.f32 %v999_v42, %v998_v39  ;;  %v1038_v56 = vpack.c.bf16 %v1034_v52, %v1034_v52 }
 0x1ae   : > { %v1015_v47 = vmul.f32 %v1006_v25, %v993_v44  ;;  %v1084_v59 = vunpack.c.l.b16 %v1037_v55 }
 0x1af   : > { %v1016_v48 = vmul.f32 %v1010_v31, %v1000_v45  ;;  %v1085_v61 = vunpack.c.l.b16 %v1038_v56 }
 0x1b0   : > { %v1031_v50 = vadd.f32 %v1022_v36, %v1015_v47 }
 0x1b1   : > { %v1032_v51 = vadd.f32 %v1026_v40, %v1016_v48 }
 0x1b2   : > { %v1035_v53 = vmax.f32 %v1031_v50, 0.0 }
 0x1b3   : > { %v1036_v54 = vmax.f32 %v1032_v51, 0.0 }
 0x1b4   : > { %v1039_v26 = vpack.c.bf16 %v1035_v53, %v1035_v53 }
 0x1b5   : > { %v1040_v28 = vpack.c.bf16 %v1036_v54, %v1036_v54 }
 0x1b6   : > { %v1086_v57 = vunpack.c.l.b16 %v1039_v26 }
 0x1b7   : > { %v1087_v58 = vunpack.c.l.b16 %v1040_v28 }
 0x1b8   : > { %v1088_v60 = vrot.slane %v1086_v57, 7 }
 0x1b9   : > { %v1091_v62 = vrot.slane %v1087_v58, 7 }
 0x1ba   : > { %v1090_v63 = vsel %vm1089_vm0, %v1088_v60, %v1084_v59 }
 0x1bb   : > { %v1092_v0 = vsel %vm1089_vm0, %v1091_v62, %v1085_v61  ;;  %v1093_v2 = vpack.c.b16 %v1090_v63, %v1090_v63 }
 0x1bc   : > { %v1094_v1 = vpack.c.b16 %v1092_v0, %v1092_v0 }
 0x1be   : > { %1225 = vmatprep.mubr.bf16.mxu1 %v1094_v1 }
 0x1bf   : > { %1226 = vmatmul.mubr.bf16.vlgmr.msra.gmra.mrb[8].mxu1 %v1093_v2 }
 0x292   : > { %v1524_v3 = vpop.f32.mrb[8].mxu1 }
 0x293   : > { %v1525_v5 = vpop.f32.mrb[9].mxu1 }
 0x294   : > { %v1526_v6 = vadd.f32 %v1525_v5, %v1524_v3  ;;  %v1527_v7 = vpop.f32.mrb[10].mxu1 }
 0x295   : > { %v1528_v8 = vpop.f32.mrb[11].mxu1 }
 0x296   : > { %v1228_v9 = vadd.f32 %v1526_v6, %v1485_v4 }
 0x298   : > { %1233 = vst [vmem:[%s398_s22] sm:$0x3] %v1228_v9 }
 0x299   : > { %1839 = shalt.err (!%p1836_p5)
}
 0x29a   : > { %s1840_s16 = scalar_lea.hbm %s2237_s12, 32  ;;  %s1844_s8 = scalar_lea.hbm %s2287_s7, 96 }
 0x29b   : > { %p1841_p8 = scmp.ne.s32.totalorder %s2237_s12, %s1840_s16  ;;  %p1845_p1 = scmp.lt.u32.totalorder %s2237_s12, %s2287_s7 }
 0x29c   : > { %p1846_p13 = scmp.lt.u32.totalorder %s1844_s8, %s1840_s16  ;;  %p1848_p3 = scmp.lt.u32.totalorder %s1840_s16, %s2237_s12 }
 0x29d   : > { %p1842_p6 = pnand %p1841_p8, %p2316_p0 }
 0x29e   : > { %p1847_p2 = por %p1846_p13, %p1845_p1 }
 0x29f   : > { %p1843_p11 = pneg %p1842_p6 }
 0x2a0   : > { %p1849_p10 = por %p1848_p3, %p1847_p2 }
 0x2a2   : > { %p1850_p12 = pnand %p1849_p10, %p1843_p11 }
 0x2a4   : > { %1853 = shalt.err (!%p1850_p12)
}
 0x2a5   : > { %1554 = dma.vmem_to_hbm [thread:$0]  (%p2316_p0), %s2239_s30, 32, %s2237_s12, %s1235_s15  }
 0x2a6 PF: > { %p1574_p7 = scmp.ge.s32.totalorder %s1896_s27, 2  ;;  %s1260_s29 = sand.u32 1, %s1884_s24  }
 0x2a7   : > { %p2317_p9 = scmp.ne.s32.totalorder %s2306_s17, 0  ;;  %s1261_s18 = scalar_lea.sflag [#allocation4], %s1260_s29 }
 0x2a9   : > { %p1568_p4 = pnand %p1574_p7, %p2317_p9 }
 0x2ab   : > { %1879 = dma.done.wait (!%p1568_p4), %s1261_s18, 32  }
 0x2ac   : > { %1881 = vsyncadd (!%p1568_p4), %s1261_s18, 4294967264  ;;  %s2318_s27 = sld [smem:[#allocation13_spill]]  ;;  %s2319_s19 = sld [smem:[#allocation12_spill]] }
 0x2ad   : > { %s2320_s26 = sld [smem:[#allocation14_spill]]  ;;  %s2321_s24 = smov %s1888_s25 }
 0x2b2   : > { %p21_p5 = scmp.ge.s32.totalorder %s2318_s27, 5   ;;  %s2322_s25 = smov %s2319_s19 }
 0x2b4   :  { %23 = sbr.rel (!%p21_p5) target bundleno = 8 (0x8), region = 121 }
 0x2bb   :  { %1266 = vsyncpa [#allocation3], 1 }
 0x2bc   :  { %1268 = vsyncpa [#allocation3 + $0x1], 1 }
 0x2bd   :  { %1269 = vsyncpa [#allocation6], 1 }
 0x2be   :  { %1271 = vsyncpa [#allocation6 + $0x1], 1 }
 0x2bf   :  { %1272 = vsyncpa [#allocation4], 1 }
 0x2c0   :  { %1274 = vsyncpa [#allocation4 + $0x1], 1 }

</bundles_post_ra>
